<compile_context>
chip_gen: v6e
topology: v6e:2x2x1
jax: 0.10.0
libtpu: 0.0.40
codegen_flags: <defaults>
</compile_context>

<pallas_src>
import jax
import jax.numpy as jnp
from jax import lax
from jax.experimental import pallas as pl
from jax.experimental.pallas import tpu as pltpu

MIN_LOG_STD = -5.0
MAX_LOG_STD = 2.0
LOG_STD_INIT = 0.0


def _gaussian_net_kernel(x_ref, w_ref, b_ref, o_ref):
    # One fused matmul for both heads: (tile_b, D_in) @ (D_in, 2*d_out).
    y = jnp.dot(x_ref[...], w_ref[...], preferred_element_type=jnp.float32)
    y = y + b_ref[...]                                  # broadcast (1, 2*d_out)

    d_out = y.shape[-1] // 2
    # First d_out lanes -> tanh (mu); last d_out lanes -> exp(clip) (std).
    # Lane-index select avoids sub-lane slicing/concat; tanh/exp go to the EUP,
    # the compare/select to the VPU — all hidden behind the single store.
    lane = lax.broadcasted_iota(jnp.int32, y.shape, 1)
    mu_full = jnp.tanh(y)
    std_full = jnp.exp(jnp.clip(y, MIN_LOG_STD, MAX_LOG_STD))
    o_ref[...] = jnp.where(lane < d_out, mu_full, std_full)


def prepare_gaussian_net_params(weight, bias):
    """One-time parameter prep (do this at init, NOT per forward call).

    weight: (2*num_outputs, num_inputs) float32   (PyTorch Linear layout)
    bias:   (2*num_outputs,) float32
    Returns:
      w_fused: (num_inputs, 2*num_outputs) float32  -- x @ w_fused layout
      b_fused: (1, 2*num_outputs) float32
    Column order [0:d_out] = mu head, [d_out:] = std head (matches torch.chunk).
    """
    w_fused = jnp.asarray(weight, jnp.float32).T
    b_fused = jnp.asarray(bias, jnp.float32).reshape(1, -1)
    return w_fused, b_fused


def gaussian_net_forward(x, w_fused, b_fused, *, tile_b=None):
    """Pallas equivalent of GaussianNet.forward.

    x:       (B, num_inputs) float32
    w_fused: (num_inputs, 2*num_outputs) float32  (from prepare_gaussian_net_params)
    b_fused: (1, 2*num_outputs) float32
    Returns (mu, std), each (B, num_outputs) float32 — the CustomNormal params.
    """
    x = jnp.asarray(x, jnp.float32)
    B, d_in = x.shape
    two_d_out = w_fused.shape[1]
    d_out = two_d_out // 2

    # Batch tiling: at small B this is a single block; at large B this shards
    # across the parallel grid axis (both TensorCores on v7x). Keep tile a
    # multiple of 8 (or the full batch).
    if tile_b is None:
        tile_b = B if B <= 512 else 512
    tile_b = max(1, min(tile_b, B))
    if tile_b != B and tile_b % 8 != 0:
        tile_b = max(8, (tile_b // 8) * 8)
    num_tiles = pl.cdiv(B, tile_b)

    cost = pl.CostEstimate(
        flops=2 * B * d_in * two_d_out,
        transcendentals=2 * B * d_out,
        bytes_accessed=4 * (B * d_in + d_in * two_d_out + two_d_out + B * two_d_out),
    )

    out = pl.pallas_call(
        _gaussian_net_kernel,
        out_shape=jax.ShapeDtypeStruct((B, two_d_out), jnp.float32),
        grid=(num_tiles,),
        in_specs=[
            pl.BlockSpec((tile_b, d_in), lambda i: (i, 0)),
            pl.BlockSpec((d_in, two_d_out), lambda i: (0, 0)),
            pl.BlockSpec((1, two_d_out), lambda i: (0, 0)),
        ],
        out_specs=pl.BlockSpec((tile_b, two_d_out), lambda i: (i, 0)),
        compiler_params=pltpu.CompilerParams(
            dimension_semantics=("parallel",)),
        cost_estimate=cost,
    )(x, w_fused, b_fused)

    # Static slices in the wrapper (cheap) — kernel emits one lane-dense block.
    mu = out[:, :d_out]
    std = out[:, d_out:]
    return mu, std


def init_gaussian_net_params(key, num_inputs, num_outputs):
    """Deterministic parameter init mirroring the module's __init__:
    orthogonal weight with gain 0.01, bias[:num_outputs] = 0,
    bias[num_outputs:] = log_std_init (= 0). Returns PyTorch-layout params."""
    num_linear_outputs = 2 * num_outputs
    a = jax.random.normal(key, (max(num_linear_outputs, num_inputs),
                                min(num_linear_outputs, num_inputs)),
                          dtype=jnp.float32)
    q, r = jnp.linalg.qr(a)
    # sign correction (as torch.nn.init.orthogonal_ does)
    q = q * jnp.sign(jnp.diag(r))[None, :]
    if num_linear_outputs < num_inputs:
        q = q.T
    weight = 0.01 * q[:num_linear_outputs, :num_inputs]
    bias = jnp.concatenate([
        jnp.zeros((num_outputs,), jnp.float32),
        jnp.full((num_outputs,), LOG_STD_INIT, jnp.float32),
    ])
    return weight, bias


def reference_forward(x, weight, bias, num_outputs):
    y = x @ weight.T + bias
    mu = jnp.tanh(y[:, :num_outputs])
    std = jnp.exp(jnp.clip(y[:, num_outputs:], MIN_LOG_STD, MAX_LOG_STD))
    return mu, std


if __name__ == "__main__":
    key = jax.random.PRNGKey(0)
    k_x, k_w = jax.random.split(key)

    B = 8            # batch
    num_inputs = 32  # hidden state size feeding GaussianNet
    num_outputs = 2  # pointnav action dim

    x = jax.random.normal(k_x, (B, num_inputs), dtype=jnp.float32)
    weight, bias = init_gaussian_net_params(k_w, num_inputs, num_outputs)

    # One-time param prep (fused / transposed layout), done outside the hot path.
    w_fused, b_fused = prepare_gaussian_net_params(weight, bias)

    mu, std = gaussian_net_forward(x, w_fused, b_fused)
    jax.block_until_ready((mu, std))

    mu_ref, std_ref = reference_forward(x, weight, bias, num_outputs)
    assert mu.shape == (B, num_outputs) and std.shape == (B, num_outputs)
    assert jnp.allclose(mu, mu_ref, atol=1e-5, rtol=1e-5)
    assert jnp.allclose(std, std_ref, atol=1e-5, rtol=1e-5)

    # TODO(synk): CustomNormal / rsample has no Pallas equivalent; downstream
    # sampling is mu + std * jax.random.normal(...) in plain JAX.
    print("KERNEL_OK")
</pallas_src>

<mosaic_0001>
module attributes {stable_mosaic.version = 11 : i64} {
  func.func @_gaussian_net_kernel(%arg0: i32, %arg1: memref<8x32xf32, #tpu.memory_space<vmem>>, %arg2: memref<32x4xf32, #tpu.memory_space<vmem>>, %arg3: memref<1x4xf32, #tpu.memory_space<vmem>>, %arg4: memref<8x4xf32, #tpu.memory_space<vmem>>) attributes {dimension_semantics = [#tpu.dimension_semantics<parallel>], iteration_bounds = array<i64: 1>, scalar_prefetch = 0 : i64, scratch_operands = 0 : i64, tpu.core_type = #tpu.core_type<tc>, window_params = [{transform_indices = @transform_0, window_bounds = array<i64: 8, 32>}, {pipeline_mode = #tpu.pipeline_mode<synchronous>, transform_indices = @transform_1, window_bounds = array<i64: 32, 4>}, {pipeline_mode = #tpu.pipeline_mode<synchronous>, transform_indices = @transform_2, window_bounds = array<i64: 1, 4>}, {transform_indices = @transform_3, window_bounds = array<i64: 8, 4>}]} {
    %c0 = arith.constant 0 : index
    %c0_0 = arith.constant 0 : index
    %0 = vector.load %arg1[%c0, %c0_0] : memref<8x32xf32, #tpu.memory_space<vmem>>, vector<8x32xf32>
    %c0_1 = arith.constant 0 : index
    %c0_2 = arith.constant 0 : index
    %1 = vector.load %arg2[%c0_1, %c0_2] : memref<32x4xf32, #tpu.memory_space<vmem>>, vector<32x4xf32>
    %cst = arith.constant dense<0.000000e+00> : vector<8x4xf32>
    %2 = tpu.matmul %0, %1, %cst {dimension_numbers = #tpu.dot_dimension_numbers<[1], [0], [0], [1], [0, 0, 1, 1], [], []>} : vector<8x32xf32>, vector<32x4xf32>, vector<8x4xf32> -> vector<8x4xf32>
    %c0_3 = arith.constant 0 : index
    %c0_4 = arith.constant 0 : index
    %3 = vector.load %arg3[%c0_3, %c0_4] : memref<1x4xf32, #tpu.memory_space<vmem>>, vector<1x4xf32>
    %4 = vector.broadcast %3 : vector<1x4xf32> to vector<8x4xf32>
    %5 = arith.addf %2, %4 : vector<8x4xf32>
    %6 = tpu.iota {dimensions = array<i32: 1>} : vector<8x4xi32>
    %7 = math.tanh %5 : vector<8x4xf32>
    %cst_5 = arith.constant -5.000000e+00 : f32
    %cst_6 = arith.constant 2.000000e+00 : f32
    %8 = vector.broadcast %cst_5 : f32 to vector<8x4xf32>
    %9 = arith.maximumf %8, %5 : vector<8x4xf32>
    %10 = vector.broadcast %cst_6 : f32 to vector<8x4xf32>
    %11 = arith.minimumf %10, %9 : vector<8x4xf32>
    %12 = math.exp %11 : vector<8x4xf32>
    %c2_i32 = arith.constant 2 : i32
    %13 = vector.broadcast %c2_i32 : i32 to vector<8x4xi32>
    %14 = arith.cmpi slt, %6, %13 : vector<8x4xi32>
    %15 = arith.select %14, %7, %12 : vector<8x4xi1>, vector<8x4xf32>
    %c0_7 = arith.constant 0 : index
    %c0_8 = arith.constant 0 : index
    %16 = vector.load %arg4[%c0_7, %c0_8] : memref<8x4xf32, #tpu.memory_space<vmem>>, vector<8x4xf32>
    tpu.vector_store %arg4[%c0_7, %c0_8], %15 {strides = array<i32>} : memref<8x4xf32, #tpu.memory_space<vmem>>, vector<8x4xf32>,
    return
  }
  func.func @transform_0(%arg0: i32) -> (i32, i32) {
    %c0_i32 = arith.constant 0 : i32
    %c0_i32_0 = arith.constant 0 : i32
    return %arg0, %c0_i32 : i32, i32
  }
  func.func @transform_1(%arg0: i32) -> (i32, i32) {
    %c0_i32 = arith.constant 0 : i32
    %c0_i32_0 = arith.constant 0 : i32
    %c0_i32_1 = arith.constant 0 : i32
    return %c0_i32, %c0_i32_0 : i32, i32
  }
  func.func @transform_2(%arg0: i32) -> (i32, i32) {
    %c0_i32 = arith.constant 0 : i32
    %c0_i32_0 = arith.constant 0 : i32
    %c0_i32_1 = arith.constant 0 : i32
    return %c0_i32, %c0_i32_0 : i32, i32
  }
  func.func @transform_3(%arg0: i32) -> (i32, i32) {
    %c0_i32 = arith.constant 0 : i32
    %c0_i32_0 = arith.constant 0 : i32
    return %arg0, %c0_i32 : i32, i32
  }
}

</mosaic_0001>

<bundles_post_ra>
// kernel: tpu_custom_call.1
= control target key start
LH: loop header
LB: loop body
LE: loop exit
PB: predicated region body
PF: predicated region fallthrough
CT: control target
= control target key end

     0   :  { %v139_v0 = vmov 0.0   ;;  %vm140_vm0 = vmmov 0   ;;  %vm26_vm1 = vcmask 261120   ;;  %v100_v13 = vlaneseq  ;;  %s182_s1 = inlined_call_operand.vmem [shape: f32[32,4], index: 1, kind: input, shape index: {}]   ;;  %s183_s0 = inlined_call_operand.vmem [shape: f32[8,32], index: 0, kind: input, shape index: {}]   ;;  %s184_s2 = inlined_call_operand.vmem [shape: f32[1,4], index: 2, kind: input, shape index: {}]   ;;  %s185_s3 = inlined_call_operand.vmem [shape: f32[8,4], index: 3, kind: output, shape index: {}]  }
   0x1   :  { %122 = vmatprep.subr.mxu0 %v139_v0  ;;  %v18_v1 = vld [vmem:[%s182_s1 + $0x18] sm:$0xff]  ;;  %v17_v2 = vld [vmem:[%s182_s1 + $0x10] sm:$0xff]  ;;  %130 = vmatprep.mubr.msk.f32.mxu0 %vm140_vm0, %v139_v0  ;;  %v16_v3 = vld [vmem:[%s182_s1 + $0x8] sm:$0xff]  ;;  %vm109_vm3 = vcmask 31744  }
   0x2   :  { %123 = vmatpush3.msra.mxu0 %v18_v1  ;;  %v15_v4 = vld [vmem:[%s182_s1] sm:$0xff]  ;;  %v101_v14 = vand.u32 127, %v100_v13 }
   0x3   :  { %124 = vmatprep.subr.mxu0 %v139_v0  ;;  %v14_v5 = vld [vmem:[%s183_s0] sm:$0xff] }
   0x4   :  { %125 = vmatpush3.msra.mxu0 %v17_v2  ;;  %v115_v6 = vld [vmem:[%s184_s2] ss:$0 sm:$0xff]  ;;  %vm107_vm2 = vcmp.lt.s32.totalorder %v101_v14, 2 }
   0x5   :  { %126 = vmatprep.subr.mxu0 %v139_v0 }
   0x6   :  { %127 = vmatpush3.msra.mxu0 %v16_v3 }
   0x7   :  { %128 = vmatprep.subr.mxu0 %v139_v0 }
   0x8   :  { %129 = vmatpush3.msra.mxu0 %v15_v4 }
   0x9   :  { %131 = vmatmul.mubr.msk.f32.vlgmr.msra.gmra.mxu0 %vm26_vm1, %v14_v5 }
  0xc9   :  { %v96_v7 = vpop.f32.mrf.mxu0 }
  0xca   :  { %v97_v8 = vadd.f32 %v115_v6, %v96_v7 }
  0xcb   :  { %v132_v9 = vpop.f32.mrf.mxu0 }
  0xcc   :  { %v103_v10 = vmax.f32 %v97_v8, -5.0  ;;  %135 = vtanh.f32 %v97_v8 }
  0xce   :  { %v104_v11 = vmin.f32 %v103_v10, 2.0 }
  0xd0   :  { %v105_v12 = vmul.f32 1.442695, %v104_v11 }
  0xd2   :  { %137 = vpow2.f32 %v105_v12 }
  0xd9   :  { %v136_v15 = vpop.eup %135 }
  0xdf   :  { %v138_v16 = vpop.eup %137 }
  0xe0   :  { %v108_v17 = vsel %vm107_vm2, %v136_v15, %v138_v16 }
  0xe1   :  { %110 = vst.msk [vmem:[%s185_s3] sm:$0xff] %vm109_vm3, %v108_v17 }

</bundles_post_ra>
